<compile_context>
chip_gen: v6e
topology: v6e:2x2x1
jax: 0.10.0
libtpu: 0.0.40
codegen_flags: <defaults>
</compile_context>

<pallas_src>
import functools

import jax
import jax.numpy as jnp
from jax.experimental import pallas as pl
from jax.experimental.pallas import tpu as pltpu


def _round_up(x, m):
    return ((x + m - 1) // m) * m


def _bigram_logits_kernel(idx_ref, table_ref, logits_ref):
    """Inference path: logits only (no loss math).

    idx_ref    : (tile, 1)       int32 token ids
    table_ref  : (V_pad, V_pad)  f32 padded embedding table (resident)
    logits_ref : (tile, V_pad)   f32 lane-dense logits block
    """
    tile = idx_ref.shape[0]
    v_pad = table_ref.shape[1]
    col = jax.lax.broadcasted_iota(jnp.int32, (tile, v_pad), 1)
    onehot = (idx_ref[...] == col).astype(jnp.float32)
    logits_ref[...] = jnp.dot(onehot, table_ref[...],
                              preferred_element_type=jnp.float32)


def _bigram_loss_kernel(idx_ref, tgt_ref, table_ref, *out_refs,
                        n_real, store_logits):
    """Training path: logits (optional) + fused cross-entropy partial sums.

    idx_ref   : (tile, 1)       int32 token ids
    tgt_ref   : (tile, 1)       int32 target ids
    table_ref : (V_pad, V_pad)  f32 table; pad columns hold -1e30 (baked mask)
    out refs  : [logits (tile, V_pad) if store_logits], loss_partial (8, 128)
                Each grid step writes its OWN partial-sum block (distinct block
                index) -> grid axis can be "parallel" (v7x megacore safe).
    """
    if store_logits:
        logits_ref, loss_ref = out_refs
    else:
        (loss_ref,) = out_refs

    tile = idx_ref.shape[0]
    v_pad = table_ref.shape[1]

    idx = idx_ref[...]                                             # (tile, 1)
    col = jax.lax.broadcasted_iota(jnp.int32, (tile, v_pad), 1)    # (tile, Vp)

    # Embedding gather as one-hot matmul (MXU).
    onehot = (idx == col).astype(jnp.float32)
    logits = jnp.dot(onehot, table_ref[...],
                     preferred_element_type=jnp.float32)           # (tile, Vp)
    if store_logits:
        logits_ref[...] = logits

    # Stable logsumexp.  Pad columns already carry -1e30 (from the padded
    # table), so no extra compare/select is needed here.
    m = jnp.max(logits, axis=-1, keepdims=True)
    lse = m + jnp.log(jnp.sum(jnp.exp(logits - m), axis=-1, keepdims=True))

    # Picked logit via one-hot masked sum (targets are always < V, never pad).
    tgt_onehot = (tgt_ref[...] == col).astype(jnp.float32)
    picked = jnp.sum(logits * tgt_onehot, axis=-1, keepdims=True)  # (tile, 1)

    # Mask padded / out-of-range rows, reduce this tile to a single scalar and
    # store it at [0, 0] of this tile's private (8, 128) partial block.
    row = (pl.program_id(0) * tile
           + jax.lax.broadcasted_iota(jnp.int32, (tile, 1), 0))
    per_row = jnp.where(row < n_real, lse - picked, 0.0)           # (tile, 1)
    tile_sum = jnp.sum(per_row, axis=(0, 1), keepdims=True)        # (1, 1)

    r8 = jax.lax.broadcasted_iota(jnp.int32, (8, 128), 0)
    c128 = jax.lax.broadcasted_iota(jnp.int32, (8, 128), 1)
    loss_ref[...] = jnp.where((r8 == 0) & (c128 == 0), tile_sum, 0.0)


def bigram_forward(idx, table, targets=None, *, row_tile=2048,
                   loss_only=False, pad_vocab=False):
    """Pallas forward pass matching BigramLanguageModel.forward.

    targets is None -> (logits (B, T, C), None)
    targets given   -> (logits (B*T, C), scalar mean cross-entropy)
                       (logits is None if loss_only=True)
    pad_vocab=True  -> logits keep the lane-padded vocab axis (C -> V_pad),
                       avoiding the post-kernel column-slice copy.
    """
    B, T = idx.shape
    V = table.shape[0]
    N = B * T

    # Lane-dense vocab padding; pad columns baked to -1e30 (softmax mask).
    V_pad = _round_up(V, 128)
    table_p = jnp.full((V_pad, V_pad), -1e30, jnp.float32).at[:V, :V].set(
        table.astype(jnp.float32))

    # Row padding only when N is not sublane-aligned (rare; keeps the common
    # path free of extra XLA pad copies on idx/targets).
    N_r = _round_up(N, 8)
    idx_flat = idx.reshape(N, 1).astype(jnp.int32)
    if N_r != N:
        idx_flat = jnp.zeros((N_r, 1), jnp.int32).at[:N].set(idx_flat)

    # Tile choice: single grid step for small problems; big MXU-aligned tiles
    # otherwise so the kernel is HBM-roofline bound, not grid-overhead bound.
    tile = N_r if N_r <= row_tile else row_tile
    num_tiles = (N_r + tile - 1) // tile
    grid = (num_tiles,)

    table_spec = pl.BlockSpec((V_pad, V_pad), lambda i: (0, 0))
    rows_spec = pl.BlockSpec((tile, 1), lambda i: (i, 0))
    logits_spec = pl.BlockSpec((tile, V_pad), lambda i: (i, 0))

    if targets is None:
        logits_p = pl.pallas_call(
            _bigram_logits_kernel,
            out_shape=jax.ShapeDtypeStruct((N_r, V_pad), jnp.float32),
            grid_spec=pltpu.PrefetchScalarGridSpec(
                num_scalar_prefetch=0,
                grid=grid,
                in_specs=[rows_spec, table_spec],
                out_specs=logits_spec,
            ),
            compiler_params=pltpu.CompilerParams(
                dimension_semantics=("parallel",)),
        )(idx_flat, table_p)
        if pad_vocab:
            # Row slice is metadata-only when N_r == N; no column-slice copy.
            return logits_p[:N].reshape(B, T, V_pad), None
        return logits_p[:N, :V].reshape(B, T, V), None

    tgt_flat = targets.reshape(N, 1).astype(jnp.int32)
    if N_r != N:
        tgt_flat = jnp.zeros((N_r, 1), jnp.int32).at[:N].set(tgt_flat)

    kernel = functools.partial(_bigram_loss_kernel, n_real=N,
                               store_logits=not loss_only)
    # Per-tile partial loss sums: one private (8,128) block per grid step.
    loss_shape = jax.ShapeDtypeStruct((num_tiles * 8, 128), jnp.float32)
    loss_spec = pl.BlockSpec((8, 128), lambda i: (i, 0))

    if loss_only:
        out_shape = loss_shape
        out_specs = loss_spec
    else:
        out_shape = (jax.ShapeDtypeStruct((N_r, V_pad), jnp.float32),
                     loss_shape)
        out_specs = [logits_spec, loss_spec]

    outs = pl.pallas_call(
        kernel,
        out_shape=out_shape,
        grid_spec=pltpu.PrefetchScalarGridSpec(
            num_scalar_prefetch=0,
            grid=grid,
            in_specs=[rows_spec, rows_spec, table_spec],
            out_specs=out_specs,
        ),
        # No revisited accumulator -> grid axis is parallel (v7x megacore).
        compiler_params=pltpu.CompilerParams(
            dimension_semantics=("parallel",)),
    )(idx_flat, tgt_flat, table_p)

    if loss_only:
        loss_part = outs
        loss = jnp.sum(loss_part) / jnp.float32(N)
        return None, loss

    logits_p, loss_part = outs
    loss = jnp.sum(loss_part) / jnp.float32(N)
    if pad_vocab:
        return logits_p[:N], loss
    return logits_p[:N, :V], loss         # PyTorch returns (B*T, C)


if __name__ == "__main__":
    # Small, deterministic setup consistent with the module.
    vocab_size = 65          # e.g. tiny-Shakespeare charset size
    B, T = 4, 16             # batch=4, seq=16  ->  B*T = 64 rows
    key = jax.random.PRNGKey(0)
    k_table, k_idx, k_tgt = jax.random.split(key, 3)

    # nn.Embedding default init: N(0, 1)
    table = jax.random.normal(k_table, (vocab_size, vocab_size), jnp.float32)
    idx = jax.random.randint(k_idx, (B, T), 0, vocab_size, jnp.int32)
    targets = jax.random.randint(k_tgt, (B, T), 0, vocab_size, jnp.int32)

    # Pure-JAX reference (embedding gather + cross-entropy).
    ref_logits = table[idx.reshape(-1)]
    ref_lse = jax.scipy.special.logsumexp(ref_logits, axis=-1)
    ref_picked = jnp.take_along_axis(
        ref_logits, targets.reshape(-1, 1), axis=-1)[:, 0]
    ref_loss = jnp.mean(ref_lse - ref_picked)

    # Training path: logits + loss.
    logits, loss = bigram_forward(idx, table, targets)
    logits = jax.block_until_ready(logits)
    loss = jax.block_until_ready(loss)
    assert logits.shape == (B * T, vocab_size)
    assert jnp.allclose(logits, ref_logits, atol=1e-5)
    assert jnp.allclose(loss, ref_loss, atol=1e-4)

    # Loss-only training path (no logits HBM writeback at all).
    _, loss_lo = bigram_forward(idx, table, targets, loss_only=True)
    loss_lo = jax.block_until_ready(loss_lo)
    assert jnp.allclose(loss_lo, ref_loss, atol=1e-4)

    # targets=None path: (B, T, C) logits, loss=None, no loss math executed.
    logits_nt, loss_nt = bigram_forward(idx, table, None)
    jax.block_until_ready(logits_nt)
    assert logits_nt.shape == (B, T, vocab_size) and loss_nt is None
    assert jnp.allclose(
        logits_nt.reshape(B * T, vocab_size), ref_logits, atol=1e-5)

    # pad_vocab=True avoids the post-kernel column-slice copy entirely.
    logits_pv, _ = bigram_forward(idx, table, None, pad_vocab=True)
    jax.block_until_ready(logits_pv)
    assert logits_pv.shape == (B, T, 128)
    assert jnp.allclose(
        logits_pv[..., :vocab_size].reshape(B * T, vocab_size),
        ref_logits, atol=1e-5)

    # TODO(synk): generate() (autoregressive multinomial sampling loop) is a
    # host-side loop around this forward, not a single Pallas kernel.
    print("KERNEL_OK")
</pallas_src>

<mosaic_0001>
module attributes {stable_mosaic.version = 11 : i64} {
  func.func @_bigram_loss_kernel(%arg0: i32, %arg1: memref<64x1xi32, #tpu.memory_space<vmem>>, %arg2: memref<64x1xi32, #tpu.memory_space<vmem>>, %arg3: memref<128x128xf32, #tpu.memory_space<vmem>>, %arg4: memref<64x128xf32, #tpu.memory_space<vmem>>, %arg5: memref<8x128xf32, #tpu.memory_space<vmem>>) attributes {dimension_semantics = [#tpu.dimension_semantics<parallel>], iteration_bounds = array<i64: 1>, scalar_prefetch = 0 : i64, scratch_operands = 0 : i64, tpu.core_type = #tpu.core_type<tc>, window_params = [{transform_indices = @transform_0, window_bounds = array<i64: 64, 1>}, {transform_indices = @transform_1, window_bounds = array<i64: 64, 1>}, {pipeline_mode = #tpu.pipeline_mode<synchronous>, transform_indices = @transform_2, window_bounds = array<i64: 128, 128>}, {transform_indices = @transform_3, window_bounds = array<i64: 64, 128>}, {transform_indices = @transform_4, window_bounds = array<i64: 8, 128>}]} {
    %c0 = arith.constant 0 : index
    %c0_0 = arith.constant 0 : index
    %0 = vector.load %arg1[%c0, %c0_0] : memref<64x1xi32, #tpu.memory_space<vmem>>, vector<64x1xi32>
    %1 = tpu.iota {dimensions = array<i32: 1>} : vector<64x128xi32>
    %2 = vector.broadcast %0 : vector<64x1xi32> to vector<64x128xi32>
    %3 = arith.cmpi eq, %2, %1 : vector<64x128xi32>
    %4 = arith.extui %3 : vector<64x128xi1> to vector<64x128xi32>
    %5 = arith.sitofp %4 : vector<64x128xi32> to vector<64x128xf32>
    %c0_1 = arith.constant 0 : index
    %c0_2 = arith.constant 0 : index
    %6 = vector.load %arg3[%c0_1, %c0_2] : memref<128x128xf32, #tpu.memory_space<vmem>>, vector<128x128xf32>
    %cst = arith.constant dense<0.000000e+00> : vector<64x128xf32>
    %7 = tpu.matmul %5, %6, %cst {dimension_numbers = #tpu.dot_dimension_numbers<[1], [0], [0], [1], [0, 0, 1, 1], [], []>} : vector<64x128xf32>, vector<128x128xf32>, vector<64x128xf32> -> vector<64x128xf32>
    %c0_3 = arith.constant 0 : index
    %c0_4 = arith.constant 0 : index
    %8 = vector.load %arg4[%c0_3, %c0_4] : memref<64x128xf32, #tpu.memory_space<vmem>>, vector<64x128xf32>
    tpu.vector_store %arg4[%c0_3, %c0_4], %7 {strides = array<i32>} : memref<64x128xf32, #tpu.memory_space<vmem>>, vector<64x128xf32>,
    %cst_5 = arith.constant dense<0xFF800000> : vector<64xf32>
    %9 = vector.multi_reduction <maximumf>, %7, %cst_5 [1] : vector<64x128xf32> to vector<64xf32>
    %10 = vector.shape_cast %9 : vector<64xf32> to vector<64x1xf32>
    %11 = vector.broadcast %10 : vector<64x1xf32> to vector<64x128xf32>
    %12 = arith.subf %7, %11 : vector<64x128xf32>
    %13 = math.exp %12 : vector<64x128xf32>
    %cst_6 = arith.constant dense<0.000000e+00> : vector<64xf32>
    %14 = vector.multi_reduction <add>, %13, %cst_6 [1] : vector<64x128xf32> to vector<64xf32>
    %15 = vector.shape_cast %14 : vector<64xf32> to vector<64x1xf32>
    %16 = math.log %15 : vector<64x1xf32>
    %17 = arith.addf %10, %16 : vector<64x1xf32>
    %c0_7 = arith.constant 0 : index
    %c0_8 = arith.constant 0 : index
    %18 = vector.load %arg2[%c0_7, %c0_8] : memref<64x1xi32, #tpu.memory_space<vmem>>, vector<64x1xi32>
    %19 = vector.broadcast %18 : vector<64x1xi32> to vector<64x128xi32>
    %20 = arith.cmpi eq, %19, %1 : vector<64x128xi32>
    %21 = arith.extui %20 : vector<64x128xi1> to vector<64x128xi32>
    %22 = arith.sitofp %21 : vector<64x128xi32> to vector<64x128xf32>
    %23 = arith.mulf %7, %22 : vector<64x128xf32>
    %cst_9 = arith.constant dense<0.000000e+00> : vector<64xf32>
    %24 = vector.multi_reduction <add>, %23, %cst_9 [1] : vector<64x128xf32> to vector<64xf32>
    %25 = vector.shape_cast %24 : vector<64xf32> to vector<64x1xf32>
    %c64_i32 = arith.constant 64 : i32
    %26 = arith.muli %arg0, %c64_i32 : i32
    %27 = tpu.iota {dimensions = array<i32: 0>} : vector<64x1xi32>
    %28 = vector.broadcast %26 : i32 to vector<64x1xi32>
    %29 = arith.addi %28, %27 : vector<64x1xi32>
    %c64_i32_10 = arith.constant 64 : i32
    %30 = vector.broadcast %c64_i32_10 : i32 to vector<64x1xi32>
    %31 = arith.cmpi slt, %29, %30 : vector<64x1xi32>
    %32 = arith.subf %17, %25 : vector<64x1xf32>
    %cst_11 = arith.constant 0.000000e+00 : f32
    %33 = vector.broadcast %cst_11 : f32 to vector<64x1xf32>
    %34 = arith.select %31, %32, %33 : vector<64x1xi1>, vector<64x1xf32>
    %35 = vector.shape_cast %34 : vector<64x1xf32> to vector<1x64x1xf32>
    %cst_12 = arith.constant dense<0.000000e+00> : vector<1xf32>
    %36 = vector.multi_reduction <add>, %35, %cst_12 [1, 2] : vector<1x64x1xf32> to vector<1xf32>
    %37 = vector.shape_cast %36 : vector<1xf32> to vector<1x1x1xf32>
    %38 = vector.extract %37[0, 0, 0] : f32 from vector<1x1x1xf32>
    %39 = vector.broadcast %38 : f32 to vector<1x1xf32>
    %40 = tpu.iota {dimensions = array<i32: 0>} : vector<8x128xi32>
    %41 = tpu.iota {dimensions = array<i32: 1>} : vector<8x128xi32>
    %c0_i32 = arith.constant 0 : i32
    %42 = vector.broadcast %c0_i32 : i32 to vector<8x128xi32>
    %43 = arith.cmpi eq, %40, %42 : vector<8x128xi32>
    %c0_i32_13 = arith.constant 0 : i32
    %44 = vector.broadcast %c0_i32_13 : i32 to vector<8x128xi32>
    %45 = arith.cmpi eq, %41, %44 : vector<8x128xi32>
    %46 = arith.andi %43, %45 : vector<8x128xi1>
    %cst_14 = arith.constant 0.000000e+00 : f32
    %47 = vector.shape_cast %39 : vector<1x1xf32> to vector<1x1xf32>
    %48 = vector.broadcast %47 : vector<1x1xf32> to vector<8x128xf32>
    %49 = vector.broadcast %cst_14 : f32 to vector<8x128xf32>
    %50 = arith.select %46, %48, %49 : vector<8x128xi1>, vector<8x128xf32>
    %c0_15 = arith.constant 0 : index
    %c0_16 = arith.constant 0 : index
    %51 = vector.load %arg5[%c0_15, %c0_16] : memref<8x128xf32, #tpu.memory_space<vmem>>, vector<8x128xf32>
    tpu.vector_store %arg5[%c0_15, %c0_16], %50 {strides = array<i32>} : memref<8x128xf32, #tpu.memory_space<vmem>>, vector<8x128xf32>,
    return
  }
  func.func @transform_0(%arg0: i32) -> (i32, i32) {
    %c0_i32 = arith.constant 0 : i32
    %c0_i32_0 = arith.constant 0 : i32
    return %arg0, %c0_i32 : i32, i32
  }
  func.func @transform_1(%arg0: i32) -> (i32, i32) {
    %c0_i32 = arith.constant 0 : i32
    %c0_i32_0 = arith.constant 0 : i32
    return %arg0, %c0_i32 : i32, i32
  }
  func.func @transform_2(%arg0: i32) -> (i32, i32) {
    %c0_i32 = arith.constant 0 : i32
    %c0_i32_0 = arith.constant 0 : i32
    %c0_i32_1 = arith.constant 0 : i32
    return %c0_i32, %c0_i32_0 : i32, i32
  }
  func.func @transform_3(%arg0: i32) -> (i32, i32) {
    %c0_i32 = arith.constant 0 : i32
    %c0_i32_0 = arith.constant 0 : i32
    return %arg0, %c0_i32 : i32, i32
  }
  func.func @transform_4(%arg0: i32) -> (i32, i32) {
    %c0_i32 = arith.constant 0 : i32
    %c0_i32_0 = arith.constant 0 : i32
    return %arg0, %c0_i32 : i32, i32
  }
}

</mosaic_0001>

<bundles_post_ra>
// kernel: tpu_custom_call.1
= control target key start
LH: loop header
LB: loop body
LE: loop exit
PB: predicated region body
PF: predicated region fallthrough
CT: control target
= control target key end

     0   :  { %10 = vsyncpa [#allocation3], 0  ;;  %v680_v2 = vmov 0   ;;  %s926_s0 = inlined_call_operand.vmem [shape: s32[64,1], index: 0, kind: input, shape index: {}]   ;;  %s927_s1 = inlined_call_operand.vmem [shape: s32[64,1], index: 1, kind: input, shape index: {}]   ;;  %s928_s2 = inlined_call_operand.vmem [shape: f32[128,128], index: 2, kind: input, shape index: {}]   ;;  %s929_s3 = inlined_call_operand.hbm [shape: f32[64,128], index: 3, kind: output, shape index: {0}]   ;;  %s930_s4 = inlined_call_operand.hbm [shape: f32[8,128], index: 4, kind: output, shape index: {1}]  }
   0x1   :  { %v20_v0 = vld [vmem:[%s926_s0 + $0x10] sm:$0xff]  ;;  %v18_v1 = vld [vmem:[%s926_s0] sm:$0xff]  ;;  %603 = vset.pattern.permute.xlu1 %v680_v2  ;;  %602 = vset.pattern.permute.xlu0 %v680_v2  ;;  %v21_v3 = vld [vmem:[%s926_s0 + $0x18] sm:$0xff] }
   0x2   :  { %35 = vperm.xlu1 %603, %v20_v0   ;;  %29 = vperm.xlu0 %602, %v18_v1   ;;  %v19_v4 = vld [vmem:[%s926_s0 + $0x8] sm:$0xff]  ;;  %v91_v5 = vld [vmem:[%s928_s2 + $0x78] sm:$0xff]  ;;  %v90_v6 = vld [vmem:[%s928_s2 + $0x70] sm:$0xff] }
   0x3   :  { %517 = vmatprep.subr.mxu0 %v91_v5  ;;  %561 = vmatprep.subr.mxu1 %v91_v5  ;;  %v89_v7 = vld [vmem:[%s928_s2 + $0x68] sm:$0xff]  ;;  %v22_v9 = vld [vmem:[%s926_s0 + $0x20] sm:$0xff] }
   0x4   :  { %518 = vmatpush3.msra.mxu0 %v91_v5  ;;  %577 = vmatpush3.msra.mxu1 %v91_v5  ;;  %v23_v8 = vld [vmem:[%s926_s0 + $0x28] sm:$0xff] }
   0x5   :  { %519 = vmatprep.subr.mxu0 %v90_v6  ;;  %562 = vmatprep.subr.mxu1 %v90_v6 }
   0x6   :  { %38 = vperm.xlu1 %603, %v21_v3   ;;  %32 = vperm.xlu0 %602, %v19_v4  }
   0x7   :  { %520 = vmatpush3.msra.mxu0 %v90_v6  ;;  %578 = vmatpush3.msra.mxu1 %v90_v6 }
   0x8   :  { %11 = vsyncpa [#allocation5], 0  ;;  %521 = vmatprep.subr.mxu0 %v89_v7  ;;  %v88_v10 = vld [vmem:[%s928_s2 + $0x60] sm:$0xff]  ;;  %563 = vmatprep.subr.mxu1 %v89_v7  ;;  %v25_v11 = vld [vmem:[%s926_s0 + $0x38] sm:$0xff]  ;;  %v26_v26 = vlaneseq  ;;  %v681_v30 = vmov 1.0  }
   0x9   :  { %v24_v12 = vld [vmem:[%s926_s0 + $0x30] sm:$0xff]  ;;  %522 = vmatpush3.msra.mxu0 %v89_v7  ;;  %579 = vmatpush3.msra.mxu1 %v89_v7  ;;  %v87_v13 = vld [vmem:[%s928_s2 + $0x58] sm:$0xff]  ;;  %v285_v15 = vld [vmem:[%s927_s1] sm:$0xff] }
   0xa   :  { %44 = vperm.xlu1 %603, %v23_v8   ;;  %41 = vperm.xlu0 %602, %v22_v9   ;;  %v86_v14 = vld [vmem:[%s928_s2 + $0x50] sm:$0xff]  ;;  %v85_v16 = vld [vmem:[%s928_s2 + $0x48] sm:$0xff]  ;;  %v84_v17 = vld [vmem:[%s928_s2 + $0x40] sm:$0xff]  ;;  %v788_v27 = vand.u32 127, %v26_v26 }
   0xb   :  { %523 = vmatprep.subr.mxu0 %v88_v10  ;;  %564 = vmatprep.subr.mxu1 %v88_v10  ;;  %v83_v18 = vld [vmem:[%s928_s2 + $0x38] sm:$0xff]  ;;  %v82_v19 = vld [vmem:[%s928_s2 + $0x30] sm:$0xff]  ;;  %v81_v20 = vld [vmem:[%s928_s2 + $0x28] sm:$0xff] }
   0xc   :  { %524 = vmatpush3.msra.mxu0 %v88_v10  ;;  %580 = vmatpush3.msra.mxu1 %v88_v10  ;;  %v80_v21 = vld [vmem:[%s928_s2 + $0x20] sm:$0xff]  ;;  %v79_v22 = vld [vmem:[%s928_s2 + $0x18] sm:$0xff]  ;;  %v78_v23 = vld [vmem:[%s928_s2 + $0x10] sm:$0xff] }
   0xd   :  { %525 = vmatprep.subr.mxu0 %v87_v13  ;;  %565 = vmatprep.subr.mxu1 %v87_v13  ;;  %v77_v24 = vld [vmem:[%s928_s2 + $0x8] sm:$0xff]  ;;  %v76_v25 = vld [vmem:[%s928_s2] sm:$0xff]  ;;  %v287_v45 = vld [vmem:[%s927_s1 + $0x10] sm:$0xff] }
   0xe   :  { %50 = vperm.xlu1 %603, %v25_v11   ;;  %47 = vperm.xlu0 %602, %v24_v12   ;;  %v286_v46 = vld [vmem:[%s927_s1 + $0x8] sm:$0xff]  ;;  %v289_v47 = vld [vmem:[%s927_s1 + $0x20] sm:$0xff]  ;;  %v291_v48 = vld [vmem:[%s927_s1 + $0x30] sm:$0xff] }
   0xf   :  { %526 = vmatpush3.msra.mxu0 %v87_v13  ;;  %581 = vmatpush3.msra.mxu1 %v87_v13  ;;  %v288_v49 = vld [vmem:[%s927_s1 + $0x18] sm:$0xff]  ;;  %v290_v50 = vld [vmem:[%s927_s1 + $0x28] sm:$0xff] }
  0x10   :  { %527 = vmatprep.subr.mxu0 %v86_v14  ;;  %566 = vmatprep.subr.mxu1 %v86_v14  ;;  %v292_v51 = vld [vmem:[%s927_s1 + $0x38] sm:$0xff]  ;;  %s683_s1 = smov [#allocation2]  }
  0x11   :  { %528 = vmatpush3.msra.mxu0 %v86_v14  ;;  %582 = vmatpush3.msra.mxu1 %v86_v14  ;;  %s444_s24 = sshll.u32 %s683_s1, 4  ;;  %s445_s24 = int_to_ptr.vmem [resolvable:$true] %s444_s24 }
  0x12   :  { %294 = vperm.xlu1 %603, %v285_v15   ;;  %529 = vmatprep.subr.mxu0 %v85_v16  ;;  %s636_s25 = scalar_lea.vmem %s445_s24, 1024  ;;  %p641_p1 = scmp.lt.s32.totalorder %s445_s24, %s445_s24 }
  0x13   :  { %530 = vmatpush3.msra.mxu0 %v85_v16  ;;  %567 = vmatprep.subr.mxu1 %v85_v16  ;;  %p637_p0 = scmp.ne.s32.totalorder %s445_s24, %s636_s25  ;;  %p642_p2 = scmp.lt.s32.totalorder %s636_s25, %s636_s25 }
  0x14   :  { %531 = vmatprep.subr.mxu0 %v84_v17  ;;  %583 = vmatpush3.msra.mxu1 %v85_v16 }
  0x15   :  { %532 = vmatpush3.msra.mxu0 %v84_v17  ;;  %568 = vmatprep.subr.mxu1 %v84_v17  ;;  %p643_p3 = por %p642_p2, %p641_p1 }
  0x16   :  { %533 = vmatprep.subr.mxu0 %v83_v18  ;;  %584 = vmatpush3.msra.mxu1 %v84_v17 }
  0x17   :  { %534 = vmatpush3.msra.mxu0 %v83_v18  ;;  %569 = vmatprep.subr.mxu1 %v83_v18  ;;  %p644_p4 = pnand %p643_p3, %p637_p0 }
  0x18   :  { %535 = vmatprep.subr.mxu0 %v82_v19  ;;  %585 = vmatpush3.msra.mxu1 %v83_v18  ;;  %v682_v18 = vmov 0.0  }
  0x19   :  { %536 = vmatpush3.msra.mxu0 %v82_v19  ;;  %570 = vmatprep.subr.mxu1 %v82_v19 }
  0x1a   :  { %537 = vmatprep.subr.mxu0 %v81_v20  ;;  %586 = vmatpush3.msra.mxu1 %v82_v19 }
  0x1b   :  { %538 = vmatpush3.msra.mxu0 %v81_v20  ;;  %571 = vmatprep.subr.mxu1 %v81_v20 }
  0x1c   :  { %539 = vmatprep.subr.mxu0 %v80_v21  ;;  %587 = vmatpush3.msra.mxu1 %v81_v20 }
  0x1d   :  { %540 = vmatpush3.msra.mxu0 %v80_v21  ;;  %572 = vmatprep.subr.mxu1 %v80_v21 }
  0x1e   :  { %541 = vmatprep.subr.mxu0 %v79_v22  ;;  %588 = vmatpush3.msra.mxu1 %v80_v21 }
  0x1f   :  { %542 = vmatpush3.msra.mxu0 %v79_v22  ;;  %573 = vmatprep.subr.mxu1 %v79_v22 }
  0x20   :  { %543 = vmatprep.subr.mxu0 %v78_v23  ;;  %589 = vmatpush3.msra.mxu1 %v79_v22 }
  0x21   :  { %544 = vmatpush3.msra.mxu0 %v78_v23  ;;  %574 = vmatprep.subr.mxu1 %v78_v23 }
  0x22   :  { %545 = vmatprep.subr.mxu0 %v77_v24  ;;  %590 = vmatpush3.msra.mxu1 %v78_v23 }
  0x23   :  { %546 = vmatpush3.msra.mxu0 %v77_v24  ;;  %575 = vmatprep.subr.mxu1 %v77_v24 }
  0x24   :  { %547 = vmatprep.subr.mxu0 %v76_v25  ;;  %591 = vmatpush3.msra.mxu1 %v77_v24 }
  0x25   :  { %548 = vmatpush3.msra.mxu0 %v76_v25  ;;  %576 = vmatprep.subr.mxu1 %v76_v25 }
  0x26   :  { %592 = vmatpush3.msra.mxu1 %v76_v25 }
  0x7d   :  { %v36_v28 = vpop.permute.xlu1 %35  ;;  %v30_v29 = vpop.permute.xlu0 %29 }
  0x7e   :  { %vm52_vm0 = vcmp.eq.s32.totalorder %v30_v29, %v788_v27  ;;  %vm54_vm2 = vcmp.eq.s32.totalorder %v36_v28, %v788_v27 }
  0x7f   :  { %549 = vmatprep.mubr.msk.f32.mxu0 %vm52_vm0, %v681_v30  ;;  %vm408_vm0 = vcmask 7168  }
  0x81   :  { %v39_v31 = vpop.permute.xlu1 %38  ;;  %v33_v32 = vpop.permute.xlu0 %32 }
  0x82   :  { %vm53_vm1 = vcmp.eq.s32.totalorder %v33_v32, %v788_v27  ;;  %vm55_vm3 = vcmp.eq.s32.totalorder %v39_v31, %v788_v27 }
  0x83   :  { %550 = vmatmul.mubr.msk.f32.vlgmr.msra.gmra.mxu0 %vm53_vm1, %v681_v30 }
  0x84   :  { %552 = vmatprep.mubr.msk.f32.mxu0 %vm54_vm2, %v681_v30 }
  0x85   :  { %v45_v33 = vpop.permute.xlu1 %44  ;;  %v42_v34 = vpop.permute.xlu0 %41 }
  0x86   :  { %vm57_vm4 = vcmp.eq.s32.totalorder %v45_v33, %v788_v27  ;;  %vm56_vm5 = vcmp.eq.s32.totalorder %v42_v34, %v788_v27 }
  0x87   :  { %553 = vmatmul.mubr.msk.f32.gmra.mxu0 %vm55_vm3, %v681_v30  ;;  %555 = vmatprep.mubr.msk.f32.mxu1 %vm56_vm5, %v681_v30 }
  0x88   :  { %556 = vmatmul.mubr.msk.f32.vlgmr.msra.gmra.mxu1 %vm57_vm4, %v681_v30 }
  0x89   :  { %v51_v35 = vpop.permute.xlu1 %50  ;;  %v48_v36 = vpop.permute.xlu0 %47 }
  0x8a   :  { %vm59_vm6 = vcmp.eq.s32.totalorder %v51_v35, %v788_v27  ;;  %vm58_vm7 = vcmp.eq.s32.totalorder %v48_v36, %v788_v27 }
  0x8b   :  { %558 = vmatprep.mubr.msk.f32.mxu1 %vm58_vm7, %v681_v30 }
  0x8c   :  { %559 = vmatmul.mubr.msk.f32.gmra.mxu1 %vm59_vm6, %v681_v30 }
  0x8d   :  { %v851_v52 = vpop.permute.xlu1 %294 }
  0x8e   :  { %vm317_vm12 = vcmp.eq.s32.totalorder %v851_v52, %v788_v27 }
 0x143   :  { %v798_v37 = vpop.f32.mrf.mxu0 }
 0x144   :  { %198 = vst [vmem:[#allocation2 + $0x8] sm:$0xff] %v798_v37  ;;  %207 = vmax.xlane.f32.xlu1 %v798_v37 }
 0x145   :  { %v802_v38 = vpop.f32.mrf.mxu0 }
 0x146   :  { %197 = vst [vmem:[#allocation2] sm:$0xff] %v802_v38 }
 0x147   :  { %v805_v39 = vpop.f32.mrf.mxu0 }
 0x148   :  { %200 = vst [vmem:[#allocation2 + $0x18] sm:$0xff] %v805_v39  ;;  %v808_v40 = vpop.f32.mrf.mxu1 }
 0x149   :  { %202 = vst [vmem:[#allocation2 + $0x28] sm:$0xff] %v808_v40  ;;  %v811_v41 = vpop.f32.mrf.mxu0  ;;  %215 = vmax.xlane.f32.xlu0 %v808_v40 }
 0x14a   :  { %199 = vst [vmem:[#allocation2 + $0x10] sm:$0xff] %v811_v41  ;;  %v815_v42 = vpop.f32.mrf.mxu1 }
 0x14b   :  { %201 = vst [vmem:[#allocation2 + $0x20] sm:$0xff] %v815_v42  ;;  %213 = vmax.xlane.f32.xlu1 %v815_v42 }
 0x14c   :  { %v819_v43 = vpop.f32.mrf.mxu1 }
 0x14d   :  { %204 = vst [vmem:[#allocation2 + $0x38] sm:$0xff] %v819_v43  ;;  %205 = vmax.xlane.f32.xlu0 %v802_v38 }
 0x14e   :  { %v823_v44 = vpop.f32.mrf.mxu1 }
 0x14f   :  { %203 = vst [vmem:[#allocation2 + $0x30] sm:$0xff] %v823_v44 }
 0x151   :  { %211 = vmax.xlane.f32.xlu0 %v805_v39 }
 0x155   :  { %219 = vmax.xlane.f32.xlu0 %v819_v43 }
 0x159   :  { %209 = vmax.xlane.f32.xlu0 %v811_v41 }
 0x15c   :  { %300 = vperm.xlu1 %603, %v287_v45  }
 0x16f   :  { %297 = vperm.xlu0 %602, %v286_v46  }
 0x173   :  { %306 = vperm.xlu0 %602, %v289_v47  }
 0x177   :  { %312 = vperm.xlu0 %602, %v291_v48  }
 0x180   :  { %217 = vmax.xlane.f32.xlu1 %v823_v44 }
 0x191   :  { %303 = vperm.xlu1 %603, %v288_v49  }
 0x195   :  { %309 = vperm.xlu1 %603, %v290_v50  }
 0x199   :  { %315 = vperm.xlu1 %603, %v292_v51  }
 0x1cd   :  { %v853_v53 = vpop.xlane.xlu1 %207 }
 0x1ce   :  { %v222_v54 = vsub.f32 %v798_v37, %v853_v53 }
 0x1d0   :  { %v231_v55 = vmul.f32 1.442695, %v222_v54 }
 0x1d2   :  { %604 = vpow2.f32 %v231_v55  ;;  %v857_v56 = vpop.xlane.xlu0 %215 }
 0x1d3   :  { %v226_v7 = vsub.f32 %v808_v40, %v857_v56 }
 0x1d4   :  { %v859_v57 = vpop.xlane.xlu1 %213 }
 0x1d5   :  { %v225_v58 = vsub.f32 %v815_v42, %v859_v57  ;;  %v239_v10 = vmul.f32 1.442695, %v226_v7 }
 0x1d6   :  { %v863_v59 = vpop.xlane.xlu0 %205 }
 0x1d7   :  { %v237_v60 = vmul.f32 1.442695, %v225_v58  ;;  %v221_v61 = vsub.f32 %v802_v38, %v863_v59 }
 0x1d8   :  { %v301_v21 = vpop.permute.xlu1 %300 }
 0x1d9   :  { %606 = vpow2.f32 %v237_v60  ;;  %v229_v62 = vmul.f32 1.442695, %v221_v61  ;;  %vm319_vm13 = vcmp.eq.s32.totalorder %v301_v21, %v788_v27 }
 0x1da   :  { %v867_v63 = vpop.xlane.xlu0 %211 }
 0x1db   :  { %608 = vpow2.f32 %v229_v62  ;;  %v224_v3 = vsub.f32 %v805_v39, %v867_v63 }
 0x1dd   :  { %v235_v8 = vmul.f32 1.442695, %v224_v3 }
 0x1de   :  { %v869_v0 = vpop.xlane.xlu0 %219 }
 0x1df   :  { %v605_v1 = vpop.eup %604  ;;  %v228_v11 = vsub.f32 %v819_v43, %v869_v0 }
 0x1e0   :  { %247 = vadd.xlane.f32.xlu1 %v605_v1 }
 0x1e1   :  { %v243_v12 = vmul.f32 1.442695, %v228_v11 }
 0x1e2   :  { %v871_v2 = vpop.xlane.xlu0 %209 }
 0x1e3   :  { %v223_v4 = vsub.f32 %v811_v41, %v871_v2 }
 0x1e5   :  { %v233_v5 = vmul.f32 1.442695, %v223_v4 }
 0x1e6   :  { %v607_v6 = vpop.eup %606 }
 0x1e7   :  { %610 = vpow2.f32 %v233_v5  ;;  %253 = vadd.xlane.f32.xlu1 %v607_v6 }
 0x1e8   :  { %v609_v9 = vpop.eup %608  ;;  %612 = vpow2.f32 %v235_v8 }
 0x1e9   :  { %245 = vadd.xlane.f32.xlu0 %v609_v9  ;;  %614 = vpow2.f32 %v239_v10 }
 0x1ea   :  { %616 = vpow2.f32 %v243_v12  ;;  %v298_v15 = vpop.permute.xlu0 %297 }
 0x1eb   :  { %vm318_vm8 = vcmp.eq.s32.totalorder %v298_v15, %v788_v27 }
 0x1ec   :  { %v486_v19 = vsel %vm318_vm8, 1.0, %v682_v18 }
 0x1ed   :  { %v342_v20 = vmul.f32 %v798_v37, %v486_v19 }
 0x1ee   :  { %v307_v37 = vpop.permute.xlu0 %306 }
 0x1ef   :  { %vm321_vm14 = vcmp.eq.s32.totalorder %v307_v37, %v788_v27 }
 0x1f2   :  { %v313_v46 = vpop.permute.xlu0 %312 }
 0x1f3   :  { %vm323_vm15 = vcmp.eq.s32.totalorder %v313_v46, %v788_v27 }
 0x1f4   :  { %v611_v13 = vpop.eup %610  ;;  %v491_v49 = vsel %vm323_vm15, 1.0, %v682_v18 }
 0x1f5   :  { %249 = vadd.xlane.f32.xlu0 %v611_v13  ;;  %v613_v14 = vpop.eup %612  ;;  %v347_v50 = vmul.f32 %v491_v49, %v823_v44 }
 0x1f6   :  { %v615_v16 = vpop.eup %614 }
 0x1f7   :  { %v617_v17 = vpop.eup %616 }
 0x1f9   :  { %251 = vadd.xlane.f32.xlu0 %v613_v14 }
 0x1fd   :  { %255 = vadd.xlane.f32.xlu0 %v615_v16 }
 0x201   :  { %259 = vadd.xlane.f32.xlu0 %v617_v17 }
 0x205   :  { %351 = vadd.xlane.f32.xlu0 %v342_v20 }
 0x209   :  { %v883_v22 = vpop.xlane.xlu1 %217 }
 0x20a   :  { %v227_v23 = vsub.f32 %v823_v44, %v883_v22 }
 0x20c   :  { %v241_v24 = vmul.f32 1.442695, %v227_v23 }
 0x20d   :  { %v304_v25 = vpop.permute.xlu1 %303 }
 0x20e   :  { %618 = vpow2.f32 %v241_v24  ;;  %vm320_vm9 = vcmp.eq.s32.totalorder %v304_v25, %v788_v27 }
 0x20f   :  { %v488_v28 = vsel %vm320_vm9, 1.0, %v682_v18 }
 0x210   :  { %v344_v29 = vmul.f32 %v805_v39, %v488_v28  ;;  %v485_v39 = vsel %vm317_vm12, 1.0, %v682_v18 }
 0x211   :  { %v310_v30 = vpop.permute.xlu1 %309  ;;  %v341_v45 = vmul.f32 %v485_v39, %v802_v38 }
 0x212   :  { %vm322_vm10 = vcmp.eq.s32.totalorder %v310_v30, %v788_v27  ;;  %355 = vadd.xlane.f32.xlu0 %v344_v29 }
 0x213   :  { %v490_v31 = vsel %vm322_vm10, 1.0, %v682_v18 }
 0x214   :  { %v346_v32 = vmul.f32 %v808_v40, %v490_v31  ;;  %v487_v40 = vsel %vm319_vm13, 1.0, %v682_v18 }
 0x215   :  { %v316_v33 = vpop.permute.xlu1 %315  ;;  %v343_v47 = vmul.f32 %v487_v40, %v811_v41 }
 0x216   :  { %vm324_vm11 = vcmp.eq.s32.totalorder %v316_v33, %v788_v27  ;;  %359 = vadd.xlane.f32.xlu0 %v346_v32 }
 0x217   :  { %v492_v34 = vsel %vm324_vm11, 1.0, %v682_v18 }
 0x218   :  { %v348_v35 = vmul.f32 %v819_v43, %v492_v34  ;;  %v489_v43 = vsel %vm321_vm14, 1.0, %v682_v18 }
 0x219   :  { %v345_v48 = vmul.f32 %v489_v43, %v815_v42 }
 0x21a   :  { %363 = vadd.xlane.f32.xlu0 %v348_v35 }
 0x21b   :  { %v619_v36 = vpop.eup %618 }
 0x21c   :  { %257 = vadd.xlane.f32.xlu1 %v619_v36 }
 0x220   :  { %349 = vadd.xlane.f32.xlu1 %v341_v45 }
 0x224   :  { %353 = vadd.xlane.f32.xlu1 %v343_v47 }
 0x228   :  { %357 = vadd.xlane.f32.xlu1 %v345_v48 }
 0x22c   :  { %361 = vadd.xlane.f32.xlu1 %v347_v50 }
 0x269   :  { %v248_v52 = vpop.xlane.xlu1 %247 }
 0x26a   :  { %620 = vlog2.f32 %v248_v52 }
 0x270   :  { %v254_v41 = vpop.xlane.xlu1 %253 }
 0x272   :  { %v246_v51 = vpop.xlane.xlu0 %245 }
 0x273   :  { %622 = vlog2.f32 %v246_v51 }
 0x277   :  { %v621_v60 = vpop.eup %620 }
 0x278   :  { %v264_v62 = vmul.f32 0.6931472, %v621_v60 }
 0x27a   :  { %v278_v7 = vadd.f32 %v264_v62, %v853_v53 }
 0x27e   :  { %v250_v38 = vpop.xlane.xlu0 %249 }
 0x27f   :  { %624 = vlog2.f32 %v250_v38 }
 0x280   :  { %v623_v42 = vpop.eup %622 }
 0x281   :  { %v262_v44 = vmul.f32 0.6931472, %v623_v42 }
 0x282   :  { %v252_v54 = vpop.xlane.xlu0 %251 }
 0x283   :  { %626 = vlog2.f32 %v252_v54  ;;  %v277_v8 = vadd.f32 %v262_v44, %v863_v59 }
 0x284   :  { %628 = vlog2.f32 %v254_v41 }
 0x286   :  { %v256_v55 = vpop.xlane.xlu0 %255 }
 0x287   :  { %630 = vlog2.f32 %v256_v55 }
 0x28a   :  { %v260_v58 = vpop.xlane.xlu0 %259 }
 0x28b   :  { %632 = vlog2.f32 %v260_v58 }
 0x28c   :  { %v625_v61 = vpop.eup %624 }
 0x28d   :  { %v266_v5 = vmul.f32 0.6931472, %v625_v61 }
 0x28e   :  { %v352_v3 = vpop.xlane.xlu0 %351 }
 0x28f   :  { %v393_v12 = vsub.f32 %v278_v7, %v352_v3  ;;  %v279_v18 = vadd.f32 %v266_v5, %v871_v2 }
 0x290   :  { %v627_v1 = vpop.eup %626 }
 0x291   :  { %v268_v6 = vmul.f32 0.6931472, %v627_v1  ;;  %v629_v9 = vpop.eup %628  ;;  %v410_v53 = vsel %vm408_vm0, %v393_v12, 0.0 }
 0x292   :  { %v270_v15 = vmul.f32 0.6931472, %v629_v9 }
 0x293   :  { %v280_v16 = vadd.f32 %v268_v6, %v867_v63 }
 0x294   :  { %v631_v14 = vpop.eup %630  ;;  %v281_v29 = vadd.f32 %v270_v15, %v859_v57 }
 0x295   :  { %v272_v20 = vmul.f32 0.6931472, %v631_v14 }
 0x297   :  { %v282_v2 = vadd.f32 %v272_v20, %v857_v56 }
 0x298   :  { %v633_v23 = vpop.eup %632 }
 0x299   :  { %v276_v63 = vmul.f32 0.6931472, %v633_v23 }
 0x29b   :  { %v356_v10 = vpop.xlane.xlu0 %355  ;;  %v284_v46 = vadd.f32 %v276_v63, %v869_v0 }
 0x29c   :  { %v395_v21 = vsub.f32 %v280_v16, %v356_v10 }
 0x29e   :  { %v414_v32 = vsel %vm408_vm0, %v395_v21, 0.0 }
 0x29f   :  { %v360_v24 = vpop.xlane.xlu0 %359 }
 0x2a0   :  { %v397_v36 = vsub.f32 %v282_v2, %v360_v24 }
 0x2a2   :  { %v418_v43 = vsel %vm408_vm0, %v397_v36, 0.0 }
 0x2a3   :  { %v364_v45 = vpop.xlane.xlu0 %363 }
 0x2a4   :  { %v399_v48 = vsub.f32 %v284_v46, %v364_v45 }
 0x2a5   :  { %v258_v4 = vpop.xlane.xlu1 %257 }
 0x2a6   :  { %634 = vlog2.f32 %v258_v4  ;;  %v422_v38 = vsel %vm408_vm0, %v399_v48, 0.0 }
 0x2a9   :  { %v350_v11 = vpop.xlane.xlu1 %349 }
 0x2aa   :  { %v392_v13 = vsub.f32 %v277_v8, %v350_v11 }
 0x2ac   :  { %v409_v17 = vsel %vm408_vm0, %v392_v13, 0.0 }
 0x2ad   :  { %v354_v19 = vpop.xlane.xlu1 %353  ;;  %v411_v25 = vadd.f32 %v410_v53, %v409_v17 }
 0x2ae   :  { %v394_v59 = vsub.f32 %v279_v18, %v354_v19 }
 0x2b0   :  { %v412_v28 = vsel %vm408_vm0, %v394_v59, 0.0 }
 0x2b1   :  { %v413_v30 = vadd.f32 %v412_v28, %v411_v25  ;;  %v358_v31 = vpop.xlane.xlu1 %357 }
 0x2b2   :  { %v396_v33 = vsub.f32 %v281_v29, %v358_v31 }
 0x2b3   :  { %v635_v34 = vpop.eup %634  ;;  %v415_v35 = vadd.f32 %v414_v32, %v413_v30 }
 0x2b4   :  { %v274_v37 = vmul.f32 0.6931472, %v635_v34  ;;  %v416_v39 = vsel %vm408_vm0, %v396_v33, 0.0 }
 0x2b5   :  { %v417_v40 = vadd.f32 %v416_v39, %v415_v35  ;;  %v362_v47 = vpop.xlane.xlu1 %361 }
 0x2b6   :  { %v283_v57 = vadd.f32 %v274_v37, %v883_v22 }
 0x2b7   :  { %v419_v50 = vadd.f32 %v418_v43, %v417_v40 }
 0x2b8   :  { %v398_v49 = vsub.f32 %v283_v57, %v362_v47 }
 0x2ba   :  { %v420_v56 = vsel %vm408_vm0, %v398_v49, 0.0 }
 0x2bb   :  { %v421_v51 = vadd.f32 %v420_v56, %v419_v50 }
 0x2bd   :  { %v423_v52 = vadd.f32 %v422_v38, %v421_v51 }
 0x2bf   :  { %424 = vadd.xlane.f32.xlu1 %v423_v52 }
 0x2c0   :  { %647 = shalt.err (!%p644_p4)
}
 0x2c1   :  { %s684_s26 = smov 128   ;;  %s685_s27 = smov 8   ;;  %v367_v42 = vshrl.u32 %v26_v26, 7  ;;  %vm434_vm2 = vcmp.eq.s32.totalorder %v788_v27, 0 }
 0x2c2   :  { %450 = dma.vmem_to_hbm [thread:$0]  %s445_s24, 1024, %s929_s3, [#allocation3], %s684_s26, %s684_s26, %s685_s27  }
 0x2c3   :  { %vm433_vm1 = vcmp.eq.s32.totalorder %v367_v42, 0  ;;  %s686_s30 = smov [#allocation4]  }
 0x2c4   :  { %s457_s5 = sshll.u32 %s686_s30, 4  ;;  %vm435_vm3 = vmand %vm433_vm1, %vm434_vm2  ;;  %s458_s5 = int_to_ptr.vmem [resolvable:$true] %s457_s5 }
 0x2c5   :  { %s656_s3 = scalar_lea.vmem %s458_s5, 128  ;;  %p661_p6 = scmp.lt.s32.totalorder %s458_s5, %s458_s5 }
 0x2c6   :  { %p657_p5 = scmp.ne.s32.totalorder %s458_s5, %s656_s3  ;;  %p662_p7 = scmp.lt.s32.totalorder %s656_s3, %s656_s3 }
 0x2c8   :  { %p663_p8 = por %p662_p7, %p661_p6 }
 0x2ca   :  { %p664_p9 = pnand %p663_p8, %p657_p5 }
 0x348   :  { %v425_v0 = vpop.xlane.xlu1 %424 }
 0x349   :  { %v426_v22 = vrot.slane %v425_v0, 4 }
 0x34b   :  { %v427_v54 = vadd.f32 %v426_v22, %v425_v0 }
 0x34d   :  { %v428_v41 = vrot.slane %v427_v54, 2 }
 0x34f   :  { %v429_v55 = vadd.f32 %v428_v41, %v427_v54 }
 0x351   :  { %v430_v58 = vrot.slane %v429_v55, 1 }
 0x353   :  { %v431_v60 = vadd.f32 %v430_v58, %v429_v55 }
 0x355   :  { %593 = vpush %v431_v60 }
 0x386   :  { %s594_s6 = spop %593 }
 0x387   :  { %v436_v61 = vstv %s594_s6 }
 0x388   :  { %v437_v62 = vsel %vm435_vm3, %v436_v61, 0.0 }
 0x389   :  { %438 = vst [vmem:[#allocation4] sm:$0xff] %v437_v62 }
 0x38a   :  { %667 = shalt.err (!%p664_p9)
}
 0x38b   :  { %460 = dma.vmem_to_hbm [thread:$0]  %s458_s5, 128, %s930_s4, [#allocation5]  }
 0x38c   :  { %676 = dma.done.wait [#allocation3], 1024  }
 0x38d   :  { %677 = vsyncadd [#allocation3], 4294966272 }
 0x38e   :  { %678 = dma.done.wait [#allocation5], 128  }
 0x38f   :  { %679 = vsyncadd [#allocation5], 4294967168 }
 0x390   :  { %467 = vsyncpa [#allocation3], 1 }
 0x391   :  { %468 = vsyncpa [#allocation5], 1 }

</bundles_post_ra>
